<compile_context>
chip_gen: v7x
topology: tpu7x:2x2x1
jax: 0.10.0
libtpu: 0.0.40
codegen_flags: <defaults>
</compile_context>

<pallas_src>
import math
import jax
import jax.numpy as jnp
from jax.experimental import pallas as pl
from jax.experimental.pallas import tpu as pltpu

# ---- config (small, consistent with the module) ----
BATCH = 2
SEQ = 8
HIDDEN = 32
NUM_HEADS = 4
HEAD_DIM = HIDDEN // NUM_HEADS          # attention_head_size


def make_attention_kernel(seq, hidden, num_heads):
    head_dim = hidden // num_heads

    def attention_kernel(x_ref, wqkv_ref, bqkv_ref, wo_ref, bo_ref, out_ref):
        # x_ref:  (S, D)   bf16   -- one batch element per grid step
        # wqkv:   (D, 3D)  bf16   (1/sqrt(hd) already folded into the Q columns)
        # bqkv:   (1, 3D)  f32
        # wo:     (D, D)   bf16
        # bo:     (1, D)   f32
        x = x_ref[...]

        # fused Q|K|V projection: one (S, D) x (D, 3D) MXU matmul, f32 accumulation
        qkv = jnp.dot(x, wqkv_ref[...],
                      preferred_element_type=jnp.float32) + bqkv_ref[...]

        # split once into head-batched layouts (no per-head 8-lane slicing)
        q = qkv[:, :hidden].reshape(seq, num_heads, head_dim)
        k = qkv[:, hidden:2 * hidden].reshape(seq, num_heads, head_dim)
        v = qkv[:, 2 * hidden:].reshape(seq, num_heads, head_dim)

        # scores (H, Sq, Sk); the 1/sqrt(head_dim) scale is baked into q already
        scores = jnp.einsum("qhd,khd->hqk", q, k,
                            preferred_element_type=jnp.float32)

        # causal mask (matches _generate_square_subsequent_mask), fused via where.
        # Large finite negative instead of -inf: identical after exp underflow, NaN-robust.
        row = jax.lax.broadcasted_iota(jnp.int32, (seq, seq), 0)
        col = jax.lax.broadcasted_iota(jnp.int32, (seq, seq), 1)
        scores = jnp.where((col <= row)[None, :, :], scores, -1e30)

        # softmax(dim=-1) in f32
        m = jnp.max(scores, axis=-1, keepdims=True)
        e = jnp.exp(scores - m)
        denom = jnp.sum(e, axis=-1, keepdims=True)
        probs = e * pl.reciprocal(denom, approx=True)
        # TODO(synk): attn_dropout / proj_dropout are identity at inference; omitted.

        # context back in (Sq, H, hd) layout -> head concat is a free reshape
        ctx = jnp.einsum("hqk,khd->qhd", probs, v,
                         preferred_element_type=jnp.float32)
        ctx2d = ctx.reshape(seq, hidden).astype(wo_ref.dtype)

        # single K=D output projection
        out = jnp.dot(ctx2d, wo_ref[...],
                      preferred_element_type=jnp.float32) + bo_ref[...]
        out_ref[...] = out.astype(out_ref.dtype)

    return attention_kernel


def attention_forward(x, params, num_heads=NUM_HEADS):
    """x: (B, S, D) float32. params: (in,out)-layout weights and (D,) biases."""
    B, S, D = x.shape
    head_dim = D // num_heads
    scale = 1.0 / math.sqrt(head_dim)

    # pack fused QKV weights/biases once in the wrapper; fold the Q scale here
    wqkv = jnp.concatenate(
        [params["wq"] * scale, params["wk"], params["wv"]], axis=1)        # (D, 3D)
    bqkv = jnp.concatenate(
        [params["bq"] * scale, params["bk"], params["bv"]]).reshape(1, 3 * D)
    wo = params["wo"]
    bo = params["bo"].reshape(1, D)

    # bf16 operands for the MXU; biases and softmax math stay f32
    x2d = x.reshape(B * S, D).astype(jnp.bfloat16)
    wqkv = wqkv.astype(jnp.bfloat16)
    wo = wo.astype(jnp.bfloat16)
    bqkv = bqkv.astype(jnp.float32)
    bo = bo.astype(jnp.float32)

    kernel = make_attention_kernel(S, D, num_heads)

    out2d = pl.pallas_call(
        kernel,
        out_shape=jax.ShapeDtypeStruct((B * S, D), jnp.float32),
        grid=(B,),
        in_specs=[
            pl.BlockSpec((S, D), lambda b: (b, 0)),        # x: one batch per step
            pl.BlockSpec((D, 3 * D), lambda b: (0, 0)),    # weights stay resident
            pl.BlockSpec((1, 3 * D), lambda b: (0, 0)),
            pl.BlockSpec((D, D), lambda b: (0, 0)),
            pl.BlockSpec((1, D), lambda b: (0, 0)),
        ],
        out_specs=pl.BlockSpec((S, D), lambda b: (b, 0)),
        compiler_params=pltpu.CompilerParams(
            dimension_semantics=("parallel",)),            # 2 TCs on v7x
    )(x2d, wqkv, bqkv, wo, bo)
    return out2d.reshape(B, S, D)


def reference_forward(x, params):
    """Pure-JAX reference reproducing the PyTorch forward (softmax mask path)."""
    B, S, D = x.shape
    q = x @ params["wq"] + params["bq"]
    k = x @ params["wk"] + params["bk"]
    v = x @ params["wv"] + params["bv"]

    def split(t):  # (B,S,D) -> (B,H,S,hd)
        return t.reshape(B, S, NUM_HEADS, HEAD_DIM).transpose(0, 2, 1, 3)

    q, k, v = split(q), split(k), split(v)
    scores = jnp.einsum("bhqd,bhkd->bhqk", q, k) / math.sqrt(HEAD_DIM)
    row = jnp.arange(S)[:, None]
    col = jnp.arange(S)[None, :]
    mask = jnp.where(col <= row, 0.0, -jnp.inf).astype(jnp.float32)
    scores = scores + mask
    probs = jax.nn.softmax(scores, axis=-1)
    ctx = jnp.einsum("bhqk,bhkd->bhqd", probs, v)
    ctx = ctx.transpose(0, 2, 1, 3).reshape(B, S, D)
    return ctx @ params["wo"] + params["bo"]


def init_params(key, hidden):
    """Deterministic init mimicking nn.Linear default (uniform(-1/sqrt(in), 1/sqrt(in)))."""
    bound = 1.0 / math.sqrt(hidden)
    keys = jax.random.split(key, 8)
    u = lambda k, shape: jax.random.uniform(k, shape, jnp.float32, -bound, bound)
    return {
        "wq": u(keys[0], (hidden, hidden)), "bq": u(keys[1], (hidden,)),
        "wk": u(keys[2], (hidden, hidden)), "bk": u(keys[3], (hidden,)),
        "wv": u(keys[4], (hidden, hidden)), "bv": u(keys[5], (hidden,)),
        "wo": u(keys[6], (hidden, hidden)), "bo": u(keys[7], (hidden,)),
    }


if __name__ == "__main__":
    root = jax.random.PRNGKey(0)
    kx, kp = jax.random.split(root)
    x = jax.random.normal(kx, (BATCH, SEQ, HIDDEN), jnp.float32)
    params = init_params(kp, HIDDEN)

    out = attention_forward(x, params)
    out = jax.block_until_ready(out)

    ref = reference_forward(x, params)
    assert out.shape == (BATCH, SEQ, HIDDEN)
    # tolerance accounts for bf16 MXU operands + approx-reciprocal softmax denominator
    assert jnp.allclose(out, ref, atol=5e-2, rtol=5e-2), "mismatch vs pure-JAX reference"
    print("KERNEL_OK")
</pallas_src>

<mosaic_0001>
module attributes {stable_mosaic.version = 11 : i64} {
  func.func @attention_kernel(%arg0: i32, %arg1: memref<8x32xbf16, #tpu.memory_space<vmem>>, %arg2: memref<32x96xbf16, #tpu.memory_space<vmem>>, %arg3: memref<1x96xf32, #tpu.memory_space<vmem>>, %arg4: memref<32x32xbf16, #tpu.memory_space<vmem>>, %arg5: memref<1x32xf32, #tpu.memory_space<vmem>>, %arg6: memref<8x32xf32, #tpu.memory_space<vmem>>) attributes {dimension_semantics = [#tpu.dimension_semantics<parallel>], iteration_bounds = array<i64: 2>, scalar_prefetch = 0 : i64, scratch_operands = 0 : i64, tpu.core_type = #tpu.core_type<tc>, window_params = [{transform_indices = @transform_0, window_bounds = array<i64: 8, 32>}, {pipeline_mode = #tpu.pipeline_mode<synchronous>, transform_indices = @transform_1, window_bounds = array<i64: 32, 96>}, {pipeline_mode = #tpu.pipeline_mode<synchronous>, transform_indices = @transform_2, window_bounds = array<i64: 1, 96>}, {pipeline_mode = #tpu.pipeline_mode<synchronous>, transform_indices = @transform_3, window_bounds = array<i64: 32, 32>}, {pipeline_mode = #tpu.pipeline_mode<synchronous>, transform_indices = @transform_4, window_bounds = array<i64: 1, 32>}, {transform_indices = @transform_5, window_bounds = array<i64: 8, 32>}]} {
    %c0 = arith.constant 0 : index
    %c0_0 = arith.constant 0 : index
    %0 = vector.load %arg1[%c0, %c0_0] : memref<8x32xbf16, #tpu.memory_space<vmem>>, vector<8x32xbf16>
    %c0_1 = arith.constant 0 : index
    %c0_2 = arith.constant 0 : index
    %1 = vector.load %arg2[%c0_1, %c0_2] : memref<32x96xbf16, #tpu.memory_space<vmem>>, vector<32x96xbf16>
    %cst = arith.constant dense<0.000000e+00> : vector<8x96xf32>
    %2 = tpu.matmul %0, %1, %cst {dimension_numbers = #tpu.dot_dimension_numbers<[1], [0], [0], [1], [0, 0, 1, 1], [], []>} : vector<8x32xbf16>, vector<32x96xbf16>, vector<8x96xf32> -> vector<8x96xf32>
    %c0_3 = arith.constant 0 : index
    %c0_4 = arith.constant 0 : index
    %3 = vector.load %arg3[%c0_3, %c0_4] : memref<1x96xf32, #tpu.memory_space<vmem>>, vector<1x96xf32>
    %4 = vector.broadcast %3 : vector<1x96xf32> to vector<8x96xf32>
    %5 = arith.addf %2, %4 : vector<8x96xf32>
    %6 = vector.extract_strided_slice %5 {offsets = [0, 0], sizes = [8, 32], strides = [1, 1]} : vector<8x96xf32> to vector<8x32xf32>
    %7 = vector.shape_cast %6 : vector<8x32xf32> to vector<8x4x8xf32>
    %8 = vector.extract_strided_slice %5 {offsets = [0, 32], sizes = [8, 32], strides = [1, 1]} : vector<8x96xf32> to vector<8x32xf32>
    %9 = vector.shape_cast %8 : vector<8x32xf32> to vector<8x4x8xf32>
    %10 = vector.extract_strided_slice %5 {offsets = [0, 64], sizes = [8, 32], strides = [1, 1]} : vector<8x96xf32> to vector<8x32xf32>
    %11 = vector.shape_cast %10 : vector<8x32xf32> to vector<8x4x8xf32>
    "tpu.trace_start"() <{level = 10 : i32, message = "qhd,khd->hqk"}> : () -> ()
    %cst_5 = arith.constant dense<0.000000e+00> : vector<4x8x8xf32>
    %12 = tpu.matmul %7, %9, %cst_5 {dimension_numbers = #tpu.dot_dimension_numbers<[2], [2], [0], [0], [0, 1, 0, 0, 1, 0], [1], [1]>} : vector<8x4x8xf32>, vector<8x4x8xf32>, vector<4x8x8xf32> -> vector<4x8x8xf32>
    "tpu.trace_stop"() : () -> ()
    %13 = tpu.iota {dimensions = array<i32: 0>} : vector<8x8xi32>
    %14 = tpu.iota {dimensions = array<i32: 1>} : vector<8x8xi32>
    %15 = arith.cmpi sle, %14, %13 : vector<8x8xi32>
    %16 = vector.shape_cast %15 : vector<8x8xi1> to vector<1x8x8xi1>
    %cst_6 = arith.constant -1.000000e+30 : f32
    %17 = vector.shape_cast %16 : vector<1x8x8xi1> to vector<1x8x8xi1>
    %18 = vector.broadcast %17 : vector<1x8x8xi1> to vector<4x8x8xi1>
    %19 = vector.broadcast %cst_6 : f32 to vector<4x8x8xf32>
    %20 = arith.select %18, %12, %19 : vector<4x8x8xi1>, vector<4x8x8xf32>
    %cst_7 = arith.constant dense<0xFF800000> : vector<4x8xf32>
    %21 = vector.multi_reduction <maximumf>, %20, %cst_7 [2] : vector<4x8x8xf32> to vector<4x8xf32>
    %22 = vector.shape_cast %21 : vector<4x8xf32> to vector<4x8x1xf32>
    %23 = vector.broadcast %22 : vector<4x8x1xf32> to vector<4x8x8xf32>
    %24 = arith.subf %20, %23 : vector<4x8x8xf32>
    %25 = math.exp %24 : vector<4x8x8xf32>
    %cst_8 = arith.constant dense<0.000000e+00> : vector<4x8xf32>
    %26 = vector.multi_reduction <add>, %25, %cst_8 [2] : vector<4x8x8xf32> to vector<4x8xf32>
    %27 = vector.shape_cast %26 : vector<4x8xf32> to vector<4x8x1xf32>
    %28 = tpu.reciprocal %27 {approx = true} : vector<4x8x1xf32> -> vector<4x8x1xf32>
    %29 = vector.broadcast %28 : vector<4x8x1xf32> to vector<4x8x8xf32>
    %30 = arith.mulf %25, %29 : vector<4x8x8xf32>
    "tpu.trace_start"() <{level = 10 : i32, message = "hqk,khd->qhd"}> : () -> ()
    %cst_9 = arith.constant dense<0.000000e+00> : vector<4x8x8xf32>
    %31 = tpu.matmul %11, %30, %cst_9 {dimension_numbers = #tpu.dot_dimension_numbers<[0], [2], [2], [1], [0, 1, 0, 2, 1, 1], [1], [0]>} : vector<8x4x8xf32>, vector<4x8x8xf32>, vector<4x8x8xf32> -> vector<4x8x8xf32>
    %32 = tpu.transpose %31, [2, 0, 1] : vector<4x8x8xf32> -> vector<8x4x8xf32>
    "tpu.trace_stop"() : () -> ()
    %33 = vector.shape_cast %32 : vector<8x4x8xf32> to vector<8x32xf32>
    %34 = arith.truncf %33 : vector<8x32xf32> to vector<8x32xbf16>
    %c0_10 = arith.constant 0 : index
    %c0_11 = arith.constant 0 : index
    %35 = vector.load %arg4[%c0_10, %c0_11] : memref<32x32xbf16, #tpu.memory_space<vmem>>, vector<32x32xbf16>
    %cst_12 = arith.constant dense<0.000000e+00> : vector<8x32xf32>
    %36 = tpu.matmul %34, %35, %cst_12 {dimension_numbers = #tpu.dot_dimension_numbers<[1], [0], [0], [1], [0, 0, 1, 1], [], []>} : vector<8x32xbf16>, vector<32x32xbf16>, vector<8x32xf32> -> vector<8x32xf32>
    %c0_13 = arith.constant 0 : index
    %c0_14 = arith.constant 0 : index
    %37 = vector.load %arg5[%c0_13, %c0_14] : memref<1x32xf32, #tpu.memory_space<vmem>>, vector<1x32xf32>
    %38 = vector.broadcast %37 : vector<1x32xf32> to vector<8x32xf32>
    %39 = arith.addf %36, %38 : vector<8x32xf32>
    %c0_15 = arith.constant 0 : index
    %c0_16 = arith.constant 0 : index
    %40 = vector.load %arg6[%c0_15, %c0_16] : memref<8x32xf32, #tpu.memory_space<vmem>>, vector<8x32xf32>
    tpu.vector_store %arg6[%c0_15, %c0_16], %39 {strides = array<i32>} : memref<8x32xf32, #tpu.memory_space<vmem>>, vector<8x32xf32>,
    return
  }
  func.func @transform_0(%arg0: i32) -> (i32, i32) {
    %c0_i32 = arith.constant 0 : i32
    %c0_i32_0 = arith.constant 0 : i32
    return %arg0, %c0_i32 : i32, i32
  }
  func.func @transform_1(%arg0: i32) -> (i32, i32) {
    %c0_i32 = arith.constant 0 : i32
    %c0_i32_0 = arith.constant 0 : i32
    %c0_i32_1 = arith.constant 0 : i32
    return %c0_i32, %c0_i32_0 : i32, i32
  }
  func.func @transform_2(%arg0: i32) -> (i32, i32) {
    %c0_i32 = arith.constant 0 : i32
    %c0_i32_0 = arith.constant 0 : i32
    %c0_i32_1 = arith.constant 0 : i32
    return %c0_i32, %c0_i32_0 : i32, i32
  }
  func.func @transform_3(%arg0: i32) -> (i32, i32) {
    %c0_i32 = arith.constant 0 : i32
    %c0_i32_0 = arith.constant 0 : i32
    %c0_i32_1 = arith.constant 0 : i32
    return %c0_i32, %c0_i32_0 : i32, i32
  }
  func.func @transform_4(%arg0: i32) -> (i32, i32) {
    %c0_i32 = arith.constant 0 : i32
    %c0_i32_0 = arith.constant 0 : i32
    %c0_i32_1 = arith.constant 0 : i32
    return %c0_i32, %c0_i32_0 : i32, i32
  }
  func.func @transform_5(%arg0: i32) -> (i32, i32) {
    %c0_i32 = arith.constant 0 : i32
    %c0_i32_0 = arith.constant 0 : i32
    return %arg0, %c0_i32 : i32, i32
  }
}

</mosaic_0001>

<bundles_post_ra>
// kernel: tpu_custom_call.1
= control target key start
LH: loop header
LB: loop body
LE: loop exit
PB: predicated region body
PF: predicated region fallthrough
CT: control target
= control target key end

     0   :  { %10 = vsyncpa [#allocation3], 0  ;;  %s2461_s0 = inlined_call_operand.hbm [shape: bf16[16,32], index: 0, kind: input, shape index: {}]   ;;  %s2462_s1 = inlined_call_operand.hbm [shape: bf16[32,96], index: 1, kind: input, shape index: {}]   ;;  %s2463_s2 = inlined_call_operand.vmem [shape: f32[1,96], index: 2, kind: input, shape index: {}]   ;;  %s2464_s3 = inlined_call_operand.hbm [shape: bf16[32,32], index: 3, kind: input, shape index: {}]   ;;  %s2465_s4 = inlined_call_operand.vmem [shape: f32[1,32], index: 4, kind: input, shape index: {}]   ;;  %s2466_s5 = inlined_call_operand.hbm [shape: f32[16,32], index: 5, kind: output, shape index: {}]  }
   0x1   :  { %12 = vsyncpa [#allocation3 + $0x1], 0 }
   0x2   :  { %13 = vsyncpa [#allocation6], 0 }
   0x3   :  { %14 = vsyncpa [#allocation4], 0 }
   0x4   :  { %16 = vsyncpa [#allocation4 + $0x1], 0  ;;  %s2148_s18 = smov 0   ;;  %s2150_s19 = smov 0  }
   0x5   :  { %s2152_s20 = smov 0   ;;  %s2154_s21 = smov 0  }
   0x6 LB: > { %s2169_s22 = sadd.s32 4294967295, %s2098_s21   ;;  %s1725_s23 = sadd.s32 4294967294, %s2098_s21   ;;  %s2098_s21 = sphi %s2154_s21, %s2486_s21   ;;  %s2094_s20 = sphi %s2152_s20, %s2485_s20   ;;  %s2090_s19 = sphi %s2150_s19, %s2484_s19   ;;  %s2086_s18 = sphi %s2148_s18, %s2483_s18  }
   0x7   : > { %p42_p0 = scmp.ne.s32.totalorder %s2090_s19, %s2086_s18  ;;  %p2467_p1 = scmp.eq.s32.totalorder %s2169_s22, 0 }
   0x8   : > { %p156_p3 = scmp.eq.s32.totalorder %s1725_s23, 1  ;;  %p1726_p5 = scmp.ge.s32.totalorder %s2098_s21, 1 }
   0x9   : > { %p2178_p4 = por %p2467_p1, %p42_p0  ;;  %p163_p7 = scmp.lt.s32.totalorder %s2098_s21, 3 }
   0xa   : > { %p2183_p6 = por %p156_p3, %p42_p0  ;;  %s2100_s27 = smov [#allocation5]  }
   0xb   : > { %s2470_s24 = scalar_select %p2178_p4, 1, 0 }
   0xc   : > { %s2471_s25 = scalar_select %p2183_p6, 1, 0 }
   0xd   : > { %p2188_p8 = pnand %p1726_p5, %p163_p7  ;;  %s175_s28 = sshll.u32 %s2100_s27, 4  ;;  %s2192_s28 = int_to_ptr.vmem [resolvable:$true] %s175_s28 }
   0xe   : > { %s2101_s30 = smov [#allocation7]   ;;  %s1942_s9 = scalar_lea.hbm %s2462_s1, 256 }
   0xf   : > { %p1853_p9 = pneg %p2188_p8  ;;  %s191_s6 = sshll.u32 %s2101_s30, 4  ;;  %s2203_s6 = int_to_ptr.vmem [resolvable:$true] %s191_s6 }
  0x10   : > { %p1943_p12 = scmp.ne.s32.totalorder %s2462_s1, %s1942_s9  ;;  %p1949_p5 = scmp.lt.u32.totalorder %s1942_s9, %s2462_s1 }
  0x11   : > { %p2199_p11 = pnand %p1853_p9, %p2467_p1 }
  0x13   : > { %p1944_p13 = pneg %p2199_p11 }
  0x15   : > { %p1945_p0 = pnand %p1944_p13, %p1943_p12 }
  0x17   : > { %p1946_p3 = pneg %p1945_p0 }
  0x19   : > { %p1951_p7 = pnand %p1949_p5, %p1946_p3 }
  0x1b   : > { %1954 = shalt.err (!%p1951_p7)
}
  0x1c   : > { %s1955_s14 = scalar_lea.vmem %s2192_s28, 256  ;;  %p1963_p2 = scmp.lt.s32.totalorder %s2192_s28, %s2192_s28 }
  0x1d   : > { %p1956_p9 = scmp.ne.s32.totalorder %s2192_s28, %s1955_s14  ;;  %p1964_p12 = scmp.lt.s32.totalorder %s1955_s14, %s1955_s14 }
  0x1f   : > { %p1958_p10 = pnand %p1956_p9, %p1944_p13  ;;  %p1965_p0 = por %p1964_p12, %p1963_p2 }
  0x21   : > { %p1959_p1 = pneg %p1958_p10 }
  0x23   : > { %p1966_p6 = pnand %p1965_p0, %p1959_p1 }
  0x25   : > { %1969 = shalt.err (!%p1966_p6)
}
  0x26   : > { %s2102_s15 = smov 64   ;;  %s2103_s16 = smov 4  }
  0x27   : > { %1856 = dma.hbm_to_vmem [thread:$0]  (!%p2199_p11), %s2462_s1, 256, %s2192_s28, [#allocation6], %s2102_s15, %s2102_s15, %s2103_s16  }
  0x28   : > { %s1970_s7 = scalar_lea.hbm %s2464_s3, 256 }
  0x29   : > { %p1971_p2 = scmp.ne.s32.totalorder %s2464_s3, %s1970_s7  ;;  %p1977_p10 = scmp.lt.u32.totalorder %s1970_s7, %s2464_s3 }
  0x2b   : > { %p1973_p1 = pnand %p1971_p2, %p1944_p13 }
  0x2d   : > { %p1974_p6 = pneg %p1973_p1 }
  0x2f   : > { %p1979_p3 = pnand %p1977_p10, %p1974_p6 }
  0x31   : > { %1982 = shalt.err (!%p1979_p3)
}
  0x32   : > { %s1983_s28 = scalar_lea.vmem %s2203_s6, 256  ;;  %p1991_p12 = scmp.lt.s32.totalorder %s2203_s6, %s2203_s6 }
  0x33   : > { %p1984_p5 = scmp.ne.s32.totalorder %s2203_s6, %s1983_s28  ;;  %p1992_p0 = scmp.lt.s32.totalorder %s1983_s28, %s1983_s28 }
  0x35   : > { %p1986_p7 = pnand %p1984_p5, %p1944_p13  ;;  %p1993_p2 = por %p1992_p0, %p1991_p12 }
  0x37   : > { %p1987_p9 = pneg %p1986_p7 }
  0x39   : > { %p1994_p1 = pnand %p1993_p2, %p1987_p9 }
  0x3b   : > { %1997 = shalt.err (!%p1994_p1)
}
  0x3c   : > { %1859 = dma.hbm_to_vmem [thread:$0]  (!%p2199_p11), %s2464_s3, 256, %s2203_s6, [#allocation6], %s2102_s15, %s2102_s15, %s2103_s16  }
  0x3d   : > { %s2258_s14 = sadd.s32 1, %s2098_s21   ;;  %s29_s29 = sadd.s32 1, %s2094_s20 }
  0x3e   : > { %s26_s17 = ssub.s32 %s2098_s21, %s2258_s14  ;;  %p36_p13 = scmp.ne.s32.totalorder %s2094_s20, %s2090_s19 }
  0x3f   : > { %p27_p6 = scmp.eq.s32.totalorder %s26_s17, 0  ;;  %p37_p10 = scmp.eq.s32.totalorder %s2098_s21, 0 }
  0x40   : > { %p2474_p3 = scmp.eq.s32.totalorder %s2169_s22, 1  ;;  %p1870_p7 = scmp.lt.s32.totalorder %s2098_s21, 2 }
  0x41   : > { %s2274_s27 = scalar_select %p27_p6, %s2094_s20, %s29_s29  }
  0x42   : > { %p2268_p5 = por %p2474_p3, %p36_p13  ;;  %p38_p9 = por %p37_p10, %p36_p13 }
  0x43   : > { %s208_s30 = sand.u32 1, %s2094_s20   ;;  %s1731_s6 = sshll.u32 %s2098_s21, 6 }
  0x44   : > { %s2475_s23 = scalar_select %p2268_p5, 1, 0 }
  0x45   : > { %s1730_s7 = sshll.u32 %s208_s30, 2  ;;  %s2281_s8 = scalar_lea.hbm %s2461_s0, %s1731_s6 }
  0x46   : > { %s212_s9 = scalar_lea.vmem [#allocation2], %s1730_s7  ;;  %p2285_p11 = pnand %p1870_p7, %p38_p9 }
  0x47   : > { %s219_s10 = sshll.u32 %s212_s9, 4  ;;  %s209_s28 = scalar_lea.sflag [#allocation3], %s208_s30  ;;  %s2283_s10 = int_to_ptr.vmem [resolvable:$true] %s219_s10 }
  0x48   : > { %s1998_s12 = scalar_lea.hbm %s2281_s8, 64  ;;  %p2000_p0 = pneg %p2285_p11 }
  0x49   : > { %p1999_p12 = scmp.ne.s32.totalorder %s2281_s8, %s1998_s12  ;;  %s2003_s17 = scalar_lea.hbm %s2461_s0, 128 }
  0x4a   : > { %p2004_p13 = scmp.lt.u32.totalorder %s2281_s8, %s2461_s0  ;;  %p2005_p6 = scmp.lt.u32.totalorder %s2003_s17, %s1998_s12 }
  0x4b   : > { %p2001_p2 = pnand %p2000_p0, %p1999_p12  ;;  %p2007_p3 = scmp.lt.u32.totalorder %s1998_s12, %s2281_s8 }
  0x4c   : > { %p2006_p10 = por %p2005_p6, %p2004_p13 }
  0x4d   : > { %p2002_p1 = pneg %p2001_p2 }
  0x4e   : > { %p2008_p7 = por %p2007_p3, %p2006_p10 }
  0x50   : > { %p2009_p9 = pnand %p2008_p7, %p2002_p1 }
  0x52   : > { %2012 = shalt.err (!%p2009_p9)
}
  0x53   : > { %s2013_s30 = scalar_lea.vmem %s2283_s10, 64  ;;  %s2104_s15 = smov [#allocation2]  }
  0x54   : > { %p2014_p12 = scmp.ne.s32.totalorder %s2283_s10, %s2013_s30  ;;  %s2018_s16 = sshll.u32 %s2104_s15, 4  ;;  %s2019_s16 = int_to_ptr.vmem [resolvable:$false] %s2018_s16 }
  0x55   : > { %s2020_s9 = scalar_lea.vmem %s2019_s16, 128  ;;  %p2021_p4 = scmp.lt.s32.totalorder %s2283_s10, %s2019_s16 }
  0x56   : > { %p2016_p2 = pnand %p2014_p12, %p2000_p0  ;;  %p2022_p13 = scmp.lt.s32.totalorder %s2020_s9, %s2013_s30 }
  0x58   : > { %p2017_p5 = pneg %p2016_p2  ;;  %p2023_p6 = por %p2022_p13, %p2021_p4 }
  0x5a   : > { %p2024_p10 = pnand %p2023_p6, %p2017_p5 }
  0x5c   : > { %2027 = shalt.err (!%p2024_p10)
}
  0x5d   : > { %1863 = dma.hbm_to_vmem [thread:$0]  (!%p2285_p11), %s2281_s8, 64, %s2283_s10, %s209_s28  }
  0x5e   : > { %228 = sbr.rel (%p2188_p8) target bundleno = 1962 (0x7aa), region = 40  ;;  %s2317_s12 = sand.u32 (!%p2188_p8), 1, %s2090_s19  }
  0x5f   : > { %s1733_s13 = sshll.u32 (!%p2188_p8), %s2317_s12, 2  ;;  %s231_s29 = scalar_lea.sflag (!%p2188_p8), [#allocation3], %s2317_s12 }
  0x60   : > { %s234_s17 = scalar_lea.vmem (!%p2188_p8), [#allocation2], %s1733_s13  ;;  %p2477_p4 = scmp.ne.s32.totalorder (!%p2188_p8), %s2470_s24, 0 }
  0x65   : > { %2073 = dma.done.wait (%p2477_p4), %s231_s29, 64  }
  0x66   : > { %2075 = vsyncadd (%p2477_p4), %s231_s29, 4294967232  ;;  %p2478_p5 = scmp.eq.s32.totalorder %s2169_s22, 0 }
  0x68   : > { %2077 = dma.done.wait (%p2478_p5), [#allocation6], 512   ;;  %p2479_p11 = pmov %p2478_p5 }
  0x69   : > { %v2105_v0 = vmov 0.0   ;;  %vm2106_vm0 = vmmov 0   ;;  %v1922_v1 = vld [vmem:[#allocation5] sm:$0xff]   ;;  %v1923_v2 = vld [vmem:[#allocation5 + $0x8] sm:$0xff]   ;;  %v270_v3 = vld [vmem:[%s234_s17] sm:$0xf]  ;;  %v774_v21 = vlaneseq }
  0x6a   : > { %2079 = vsyncadd (%p2479_p11), [#allocation6], 4294966784  ;;  %1785 = vmatprep.subr.bf16.mxu0 %v2105_v0  ;;  %1789 = vmatprep.mubr.msk.bf16.mxu0 %vm2106_vm0, %v2105_v0  ;;  %vm294_vm1 = vcmask 261120   ;;  %v1737_v4 = vld [vmem:[%s2463_s2] ss:$0 sm:$0xff]  ;;  %s2107_s8 = smov 104  }
  0x6b   : > { %1793 = vmatprep.subr.mxu1 %v2105_v0  ;;  %1795 = vmatprep.mubr.msk.f32.mxu1 %vm2106_vm0, %v2105_v0  ;;  %s2108_s10 = smov 120   ;;  %s2109_s11 = smov 96   ;;  %vm485_vm2 = vcmask 64512   ;;  %v2366_v22 = vshrl.u32 %v774_v21, 7  ;;  %v777_v23 = vand.u32 127, %v774_v21  ;;  %vm1550_vm4 = vcmask 130048  }
  0x6c   : > { %1786 = vmatpush3.bf16.msra.mxu0 %v1922_v1  ;;  %s2110_s28 = smov 112   ;;  %s2111_s7 = smov 64   ;;  %vm1552_vm5 = vcmask 195584  }
  0x6d   : > { %1787 = vmatprep.subr.bf16.mxu0 %v2105_v0  ;;  %vm778_vm3 = vcmp.le.s32.totalorder %v777_v23, %v2366_v22  ;;  %s2114_s6 = smov 16   ;;  %s2115_s30 = smov 8  }
  0x6e   : > { %s2116_s15 = smov 24   ;;  %s1736_s16 = sshll.u32 %s2317_s12, 3 }
  0x6f   : > { %s1760_s29 = sshll.u32 %s2169_s22, 7  ;;  %s268_s17 = scalar_lea.vmem [#allocation8], %s1736_s16 }
  0x70   : > { %1788 = vmatpush3.bf16.msra.mxu0 %v1923_v2  ;;  %s1636_s24 = sshll.u32 %s268_s17, 4  ;;  %s1623_s22 = scalar_lea.sflag [#allocation4], %s2317_s12  ;;  %s2418_s24 = int_to_ptr.vmem [resolvable:$true] %s1636_s24 }
  0x71   : > { %1823 = vmatprep.subr.mxu0 %v2105_v0  ;;  %p2480_p0 = scmp.ne.s32.totalorder %s2475_s23, 0 }
  0x73   : > { %1790 = vmatmul.mubr.msk.bf16.vlgmr.msra.gmra.mrb[0].mxu0 %vm294_vm1, %v270_v3 }
  0x74   : > { %1825 = vmatprep.mubr.msk.f32.mxu0 %vm2106_vm0, %v2105_v0 }
 0x146   : > { %v332_v5 = vpop.f32.mrb[0].mxu0 }
 0x147   : > { %v2343_v6 = vadd.f32 %v1737_v4, %v332_v5  ;;  %v1791_v7 = vpop.f32.mrb[1].mxu0 }
 0x148   : > { %v335_v8 = vpop.f32.mrb[2].mxu0 }
 0x149   : > { %343 = vrot.lane.b32.xlu1 %v2343_v6, %s2107_s8  ;;  %339 = vrot.lane.b32.xlu0 %v2343_v6, %s2108_s10  ;;  %v1792_v9 = vpop.f32.mrb[3].mxu0  ;;  %s2416_s10 = scalar_lea.hbm %s2466_s5, %s1760_s29 }
 0x14d   : > { %345 = vrot.lane.b32.xlu1 %v2343_v6, %s2109_s11  ;;  %341 = vrot.lane.b32.xlu0 %v2343_v6, %s2110_s28  ;;  %s2117_s28 = smov [#allocation8]  }
 0x1bb   : > { %v340_v10 = vpop.permute.xlu0 %339  ;;  %v344_v11 = vpop.permute.xlu1 %343 }
 0x1bc   : > { %347 = vrot.lane.b32.xlu0 %v340_v10, %s2109_s11 }
 0x1bf   : > { %v342_v12 = vpop.permute.xlu0 %341  ;;  %v346_v13 = vpop.permute.xlu1 %345 }
 0x1c0   : > { %351 = vrot.lane.b32.xlu0 %v344_v11, %s2109_s11  ;;  %349 = vrot.lane.b32.xlu1 %v342_v12, %s2109_s11  ;;  %s2028_s11 = scalar_lea.vmem %s2418_s24, 128 }
 0x1c1   : > { %p2029_p8 = scmp.ne.s32.totalorder %s2418_s24, %s2028_s11 }
 0x1c3   : > { %p2030_p1 = pnand %p2029_p8, %p2480_p0 }
 0x1c5   : > { %p2031_p3 = pneg %p2030_p1 }
 0x1e9   : > { %357 = vxpose.xlu1.b32.start.end [1/1] (short) (narrow) %v346_v13, 8 }
 0x22e   : > { %v348_v14 = vpop.permute.xlu0 %347 }
 0x22f   : > { %389 = vxpose.xlu0.b32.start.end [1/1] (short) (narrow) %v348_v14, 8 }
 0x232   : > { %v350_v15 = vpop.permute.xlu1 %349  ;;  %v352_v16 = vpop.permute.xlu0 %351 }
 0x233   : > { %421 = vxpose.xlu0.b32.start.end [1/1] (short) (narrow) %v350_v15, 8 }
 0x237   : > { %453 = vxpose.xlu0.b32.start.end [1/1] (short) (narrow) %v352_v16, 8 }
 0x269   : > { %v373_v17 = vpop.trf.xlu1 }
 0x26a   : > { %1794 = vmatpush3.msra.mxu1 %v373_v17 }
 0x26b   : > { %1796 = vmatmul.mubr.msk.f32.vlgmr.msra.gmra.mrb[0].mxu1 %vm485_vm2, %v2343_v6  ;;  %1798 = vmatprep.subr.mxu1 %v2105_v0 }
 0x26c   : > { %1800 = vmatprep.mubr.msk.f32.mxu1 %vm2106_vm0, %v2105_v0 }
 0x2af   : > { %v405_v18 = vpop.trf.xlu0 }
 0x2b0   : > { %1799 = vmatpush3.msra.mxu1 %v405_v18 }
 0x2b1   : > { %1801 = vmatmul.mubr.msk.f32.vlgmr.msra.gmra.mrb[2].mxu1 %vm485_vm2, %v340_v10  ;;  %1803 = vmatprep.subr.mxu1 %v2105_v0 }
 0x2b2   : > { %1805 = vmatprep.mubr.msk.f32.mxu1 %vm2106_vm0, %v2105_v0 }
 0x2b3   : > { %v437_v19 = vpop.trf.xlu0 }
 0x2b4   : > { %1804 = vmatpush3.msra.mxu1 %v437_v19 }
 0x2b5   : > { %1806 = vmatmul.mubr.msk.f32.vlgmr.msra.gmra.mrb[4].mxu1 %vm485_vm2, %v342_v12  ;;  %1808 = vmatprep.subr.mxu1 %v2105_v0 }
 0x2b6   : > { %1810 = vmatprep.mubr.msk.f32.mxu1 %vm2106_vm0, %v2105_v0 }
 0x2b7   : > { %v469_v20 = vpop.trf.xlu0 }
 0x2b8   : > { %1809 = vmatpush3.msra.mxu1 %v469_v20 }
 0x2b9   : > { %1811 = vmatmul.mubr.msk.f32.vlgmr.msra.gmra.mrb[6].mxu1 %vm485_vm2, %v344_v11  ;;  %1813 = vmatprep.subr.mxu1 %v2105_v0 }
 0x2ba   : > { %1815 = vmatprep.mubr.msk.f32.mxu1 %vm2106_vm0, %v2105_v0 }
 0x33e   : > { %v554_v24 = vpop.f32.mrb[0].mxu1 }
 0x33f   : > { %v781_v25 = vsel %vm778_vm3, %v554_v24, -1e+30  ;;  %v1797_v26 = vpop.f32.mrb[1].mxu1 }
 0x340   : > { %v785_v27 = vsel %vm485_vm2, %v781_v25, -inf }
 0x341   : > { %786 = vmax.xlane.f32.xlu1 %v785_v27  ;;  %v2112_v27 = vmov 1983009808  }
 0x384   : > { %v626_v28 = vpop.f32.mrb[2].mxu1 }
 0x385   : > { %v782_v29 = vsel %vm778_vm3, %v626_v28, -1e+30  ;;  %v1802_v30 = vpop.f32.mrb[3].mxu1  ;;  %v1404_v28 = vunpack.c.l.s4 %v2112_v27 }
 0x386   : > { %v788_v31 = vsel %vm485_vm2, %v782_v29, -inf }
 0x387   : > { %789 = vmax.xlane.f32.xlu0 %v788_v31  ;;  %v1405_v31 = vunpack.c.0.s8 %v1404_v28 }
 0x388   : > { %v698_v32 = vpop.f32.mrb[4].mxu1 }
 0x389   : > { %v783_v33 = vsel %vm778_vm3, %v698_v32, -1e+30  ;;  %v1807_v34 = vpop.f32.mrb[5].mxu1 }
 0x38a   : > { %v791_v35 = vsel %vm485_vm2, %v783_v33, -inf }
 0x38b   : > { %792 = vmax.xlane.f32.xlu1 %v791_v35  ;;  %v1408_v35 = vsub.s32 %v1405_v31, %v2366_v22 }
 0x38c   : > { %v770_v36 = vpop.f32.mrb[6].mxu1 }
 0x38d   : > { %v784_v37 = vsel %vm778_vm3, %v770_v36, -1e+30  ;;  %v1812_v38 = vpop.f32.mrb[7].mxu1 }
 0x38e   : > { %v794_v39 = vsel %vm485_vm2, %v784_v37, -inf }
 0x38f   : > { %795 = vmax.xlane.f32.xlu1 %v794_v39 }
 0x39d   : > { %829 = vrot.lane.b32.xlu0 %v2343_v6, %s2111_s7 }
 0x3a0   : > { %831 = vrot.lane.b32.xlu1 %v340_v10, %s2111_s7 }
 0x3a1   : > { %833 = vrot.lane.b32.xlu0 %v342_v12, %s2111_s7 }
 0x3a5   : > { %835 = vrot.lane.b32.xlu0 %v344_v11, %s2111_s7  ;;  %s2032_s7 = sshll.u32 %s2117_s28, 4  ;;  %s2033_s7 = int_to_ptr.vmem [resolvable:$false] %s2032_s7 }
 0x3a6   : > { %p2035_p7 = scmp.lt.s32.totalorder %s2418_s24, %s2033_s7 }
 0x3ce   : > { %v787_v40 = vpop.xlane.xlu1 %786 }
 0x3cf   : > { %v797_v41 = vsub.f32 %v781_v25, %v787_v40 }
 0x3d1   : > { %v801_v42 = vmul.f32 1.442695, %v797_v41 }
 0x3d3   : > { %1926 = vpow2.f32 %v801_v42 }
 0x3dd   : > { %v1927_v43 = vpop.eup %1926 }
 0x3de   : > { %v809_v44 = vsel %vm485_vm2, %v1927_v43, 0.0 }
 0x3df   : > { %810 = vadd.xlane.f32.xlu1 %v809_v44 }
 0x414   : > { %v790_v45 = vpop.xlane.xlu0 %789 }
 0x415   : > { %v798_v46 = vsub.f32 %v782_v29, %v790_v45  ;;  %v2113_v29 = vmov 1934713408  }
 0x416   : > { %v1436_v30 = vunpack.c.l.s4 %v2113_v29 }
 0x417   : > { %v803_v47 = vmul.f32 1.442695, %v798_v46 }
 0x418   : > { %v793_v48 = vpop.xlane.xlu1 %792  ;;  %v830_v60 = vpop.permute.xlu0 %829  ;;  %v1437_v34 = vunpack.c.0.s8 %v1436_v30 }
 0x419   : > { %1928 = vpow2.f32 %v803_v47  ;;  %v799_v49 = vsub.f32 %v783_v33, %v793_v48 }
 0x41a   : > { %v1440_v41 = vsub.s32 %v1437_v34, %v2366_v22 }
 0x41b   : > { %v805_v50 = vmul.f32 1.442695, %v799_v49 }
 0x41c   : > { %v796_v51 = vpop.xlane.xlu1 %795  ;;  %v834_v61 = vpop.permute.xlu0 %833 }
 0x41d   : > { %1930 = vpow2.f32 %v805_v50  ;;  %v800_v52 = vsub.f32 %v784_v37, %v796_v51  ;;  %v1924_v50 = vld [vmem:[#allocation7] sm:$0xff]  }
 0x41f   : > { %v807_v53 = vmul.f32 1.442695, %v800_v52 }
 0x420   : > { %v836_v62 = vpop.permute.xlu0 %835  ;;  %v832_v63 = vpop.permute.xlu1 %831 }
 0x421   : > { %1932 = vpow2.f32 %v807_v53 }
 0x423   : > { %v1929_v54 = vpop.eup %1928 }
 0x424   : > { %v812_v55 = vsel %vm485_vm2, %v1929_v54, 0.0 }
 0x425   : > { %813 = vadd.xlane.f32.xlu0 %v812_v55 }
 0x427   : > { %v1931_v56 = vpop.eup %1930 }
 0x428   : > { %v815_v57 = vsel %vm485_vm2, %v1931_v56, 0.0 }
 0x429   : > { %816 = vadd.xlane.f32.xlu1 %v815_v57 }
 0x42b   : > { %v1933_v58 = vpop.eup %1932 }
 0x42c   : > { %v818_v59 = vsel %vm485_vm2, %v1933_v58, 0.0 }
 0x42d   : > { %819 = vadd.xlane.f32.xlu1 %v818_v59 }
 0x452   : > { %841 = vxpose.xlu0.b32.start.end [1/1] (short) (narrow) %v830_v60, 8 }
 0x456   : > { %905 = vxpose.xlu0.b32.start.end [1/1] (short) (narrow) %v834_v61, 8 }
 0x45a   : > { %937 = vxpose.xlu0.b32.start.end [1/1] (short) (narrow) %v836_v62, 8 }
 0x460   : > { %873 = vxpose.xlu1.b32.start.end [1/1] (short) (narrow) %v832_v63, 8 }
 0x46c   : > { %v811_v1 = vpop.xlane.xlu1 %810 }
 0x46d   : > { %1934 = vrcp.f32 %v811_v1 }
 0x477   : > { %v1935_v2 = vpop.eup %1934 }
 0x478   : > { %v825_v3 = vmul.f32 %v1935_v2, %v1927_v43 }
 0x47a   : > { %1814 = vmatpush3.xpose.msk.msra.mxu1 %vm485_vm2, %v825_v3 }
 0x47b   : > { %1818 = vmatprep.subr.mxu1 %v2105_v0 }
 0x4b2   : > { %v814_v6 = vpop.xlane.xlu0 %813 }
 0x4b6   : > { %v817_v4 = vpop.xlane.xlu1 %816 }
 0x4b7   : > { %1936 = vrcp.f32 %v817_v4 }
 0x4b8   : > { %1938 = vrcp.f32 %v814_v6 }
 0x4ba   : > { %v820_v9 = vpop.xlane.xlu1 %819 }
 0x4bb   : > { %1940 = vrcp.f32 %v820_v9 }
 0x4c1   : > { %v1937_v5 = vpop.eup %1936 }
 0x4c2   : > { %v827_v7 = vmul.f32 %v1937_v5, %v1931_v56  ;;  %v1939_v8 = vpop.eup %1938 }
 0x4c3   : > { %v826_v10 = vmul.f32 %v1939_v8, %v1929_v54 }
 0x4c4   : > { %1824 = vmatpush3.xpose.msk.msra.mxu0 %vm485_vm2, %v827_v7 }
 0x4c5   : > { %1833 = vmatprep.subr.bf16.mxu0 %v2105_v0  ;;  %v1941_v13 = vpop.eup %1940 }
 0x4c6   : > { %v828_v14 = vmul.f32 %v1941_v13, %v1933_v58  ;;  %v1925_v58 = vld [vmem:[#allocation7 + $0x8] sm:$0xff]  }
 0x4d2   : > { %v857_v11 = vpop.trf.xlu0 }
 0x4d3   : > { %1816 = vmatmul.mubr.msk.f32.vlgmr.msra.gmra.mrb[8].mxu1 %vm485_vm2, %v857_v11 }
 0x4d4   : > { %1819 = vmatpush3.xpose.msk.msra.mxu1 %vm485_vm2, %v826_v10  ;;  %1820 = vmatprep.mubr.msk.f32.mxu1 %vm2106_vm0, %v2105_v0 }
 0x4d5   : > { %1828 = vmatprep.subr.mxu1 %v2105_v0 }
 0x4d6   : > { %v921_v12 = vpop.trf.xlu0 }
 0x4d7   : > { %1826 = vmatmul.mubr.msk.f32.vlgmr.msra.gmra.mrb[4].mxu0 %vm485_vm2, %v921_v12 }
 0x4d8   : > { %1837 = vmatprep.mubr.msk.bf16.mxu0 %vm2106_vm0, %v2105_v0  ;;  %1834 = vmatpush3.bf16.msra.mxu0 %v1924_v50 }
 0x4d9   : > { %1835 = vmatprep.subr.bf16.mxu0 %v2105_v0 }
 0x4da   : > { %v953_v16 = vpop.trf.xlu0 }
 0x4dc   : > { %1836 = vmatpush3.bf16.msra.mxu0 %v1925_v58 }
 0x4e0   : > { %v889_v15 = vpop.trf.xlu1 }
 0x4e1   : > { %1821 = vmatmul.mubr.msk.f32.vlgmr.msra.gmra.mrb[10].mxu1 %vm485_vm2, %v889_v15 }
 0x4e2   : > { %1829 = vmatpush3.xpose.msk.msra.mxu1 %vm485_vm2, %v828_v14  ;;  %1830 = vmatprep.mubr.msk.f32.mxu1 %vm2106_vm0, %v2105_v0 }
 0x4e5   : > { %1831 = vmatmul.mubr.msk.f32.vlgmr.msra.gmra.mrb[12].mxu1 %vm485_vm2, %v953_v16 }
 0x5a6   : > { %v1041_v17 = vpop.f32.mrb[8].mxu1 }
 0x5a7   : > { %v1817_v18 = vpop.f32.mrb[9].mxu1  ;;  %1273 = vxpose.xlu1.b32.start.end [1/1] (short) (narrow) %v1041_v17, 8 }
 0x5a8   : > { %v1755_v18 = vld [vmem:[%s2465_s4] ss:$0 sm:$0xff] }
 0x5aa   : > { %v1193_v19 = vpop.f32.mrb[4].mxu0 }
 0x5ab   : > { %v1827_v20 = vpop.f32.mrb[5].mxu0  ;;  %1337 = vxpose.xlu1.b32.start.end [1/1] (short) (narrow) %v1193_v19, 8 }
 0x5b4   : > { %v1117_v21 = vpop.f32.mrb[10].mxu1 }
 0x5b5   : > { %1305 = vxpose.xlu0.b32.start.end [1/1] (short) (narrow) %v1117_v21, 8  ;;  %v1822_v23 = vpop.f32.mrb[11].mxu1 }
 0x5b8   : > { %v1269_v24 = vpop.f32.mrb[12].mxu1 }
 0x5b9   : > { %1369 = vxpose.xlu0.b32.start.end [1/1] (short) (narrow) %v1269_v24, 8  ;;  %v1832_v25 = vpop.f32.mrb[13].mxu1 }
 0x627   : > { %v1289_v26 = vpop.trf.xlu1 }
 0x62b   : > { %v1353_v33 = vpop.trf.xlu1 }
 0x62c   : > { %v1401_v36 = vcombine.low %v1289_v26, %v1353_v33  ;;  %v1402_v37 = vcombine.high %v1289_v26, %v1353_v33 }
 0x62e   : > { %v1409_v42 = vrot.slane %v1401_v36, %v1408_v35  ;;  %v1416_v43 = vrot.slane %v1402_v37, %v1408_v35 }
 0x635   : > { %v1321_v32 = vpop.trf.xlu0 }
 0x639   : > { %v1385_v38 = vpop.trf.xlu0 }
 0x63a   : > { %v1417_v39 = vcombine.low %v1321_v32, %v1385_v38  ;;  %v1418_v40 = vcombine.high %v1321_v32, %v1385_v38 }
 0x63c   : > { %v1425_v44 = vrot.slane %v1417_v39, %v1408_v35  ;;  %v1432_v45 = vrot.slane %v1418_v40, %v1408_v35 }
 0x63e   : > { %v1433_v46 = vcombine.low %v1409_v42, %v1425_v44  ;;  %v1434_v47 = vcombine.high %v1409_v42, %v1425_v44  ;;  %v1449_v48 = vcombine.low %v1416_v43, %v1432_v45  ;;  %v1450_v49 = vcombine.high %v1416_v43, %v1432_v45 }
 0x640   : > { %v1441_v51 = vrot.slane %v1433_v46, %v1440_v41  ;;  %v1448_v52 = vrot.slane %v1434_v47, %v1440_v41  ;;  %v1457_v53 = vrot.slane %v1449_v48, %v1440_v41  ;;  %v1464_v54 = vrot.slane %v1450_v49, %v1440_v41 }
 0x642   : > { %v1469_v55 = vcombine.low %v1441_v51, %v1448_v52  ;;  %v1753_v56 = vcombine.high %v1441_v51, %v1448_v52  ;;  %v1485_v57 = vcombine.low %v1457_v53, %v1464_v54  ;;  %v1754_v22 = vcombine.high %v1457_v53, %v1464_v54 }
 0x644   : > { %v1476_v59 = vrot.slane %v1469_v55, %v1408_v35  ;;  %v1484_v60 = vrot.slane %v1753_v56, %v1408_v35  ;;  %v1492_v61 = vrot.slane %v1485_v57, %v1408_v35  ;;  %v1500_v62 = vrot.slane %v1754_v22, %v1408_v35 }
 0x646   : > { %v1502_v63 = vcombine.high %v1476_v59, %v1484_v60  ;;  %v1518_v1 = vcombine.high %v1492_v61, %v1500_v62  ;;  %v1501_v2 = vcombine.low %v1476_v59, %v1484_v60  ;;  %v1517_v3 = vcombine.low %v1492_v61, %v1500_v62 }
 0x648   : > { %v1516_v4 = vrot.slane %v1502_v63, %v1440_v41  ;;  %v1532_v5 = vrot.slane %v1518_v1, %v1440_v41  ;;  %v1509_v6 = vrot.slane %v1501_v2, %v1440_v41  ;;  %v1525_v7 = vrot.slane %v1517_v3, %v1440_v41 }
 0x64a   : > { %v1535_v8 = vcombine.low %v1516_v4, %v1532_v5  ;;  %v1534_v0 = vcombine.high %v1509_v6, %v1525_v7  ;;  %v1533_v9 = vcombine.low %v1509_v6, %v1525_v7  ;;  %v1536_v10 = vcombine.high %v1516_v4, %v1532_v5 }
 0x64c   : > { %1542 = vrot.lane.b32.xlu0 %v1535_v8, %s2114_s6  ;;  %1538 = vrot.lane.b32.xlu1 %v1534_v0, %s2115_s30  ;;  %s2034_s6 = scalar_lea.vmem %s2033_s7, 256 }
 0x64d   : > { %p2036_p9 = scmp.lt.s32.totalorder %s2034_s6, %s2028_s11 }
 0x64f   : > { %p2037_p12 = por %p2036_p9, %p2035_p7 }
 0x650   : > { %1546 = vrot.lane.b32.xlu1 %v1536_v10, %s2116_s15 }
 0x651   : > { %p2038_p2 = pnand %p2037_p12, %p2031_p3 }
 0x6be   : > { %v1539_v11 = vpop.permute.xlu1 %1538  ;;  %v1543_v12 = vpop.permute.xlu0 %1542 }
 0x6bf   : > { %v1549_v13 = vsel %vm485_vm2, %v1533_v9, %v1539_v11 }
 0x6c0   : > { %v1551_v15 = vsel %vm1550_vm4, %v1549_v13, %v1543_v12 }
 0x6c2   : > { %v1547_v14 = vpop.permute.xlu1 %1546 }
 0x6c3   : > { %v1553_v16 = vsel %vm1552_vm5, %v1551_v15, %v1547_v14 }
 0x6c4   : > { %v1554_v17 = vpack.c.bf16 %v1553_v16, %v1553_v16 }
 0x6c6   : > { %1838 = vmatmul.mubr.msk.bf16.vlgmr.msra.gmra.mrb[8].mxu0 %vm294_vm1, %v1554_v17 }
 0x799   : > { %v1615_v19 = vpop.f32.mrb[8].mxu0 }
 0x79a   : > { %v1616_v20 = vadd.f32 %v1755_v18, %v1615_v19  ;;  %v1839_v21 = vpop.f32.mrb[9].mxu0 }
 0x79b   : > { %v1618_v23 = vpop.f32.mrb[10].mxu0 }
 0x79c   : > { %v1840_v24 = vpop.f32.mrb[11].mxu0  ;;  %1621 = vst.msk [vmem:[%s268_s17] sm:$0xff] %vm294_vm1, %v1616_v20 }
 0x79d   : > { %2041 = shalt.err (!%p2038_p2)
}
 0x79e   : > { %s2042_s12 = scalar_lea.hbm %s2416_s10, 128  ;;  %s2046_s16 = scalar_lea.hbm %s2466_s5, 256 }
 0x79f   : > { %p2043_p13 = scmp.ne.s32.totalorder %s2416_s10, %s2042_s12  ;;  %p2047_p4 = scmp.lt.u32.totalorder %s2416_s10, %s2466_s5 }
 0x7a0   : > { %p2048_p5 = scmp.lt.u32.totalorder %s2046_s16, %s2042_s12  ;;  %p2050_p8 = scmp.lt.u32.totalorder %s2042_s12, %s2416_s10 }
 0x7a1   : > { %p2044_p6 = pnand %p2043_p13, %p2480_p0 }
 0x7a2   : > { %p2049_p11 = por %p2048_p5, %p2047_p4 }
 0x7a3   : > { %p2045_p10 = pneg %p2044_p6 }
 0x7a4   : > { %p2051_p1 = por %p2050_p8, %p2049_p11 }
 0x7a6   : > { %p2052_p3 = pnand %p2051_p1, %p2045_p10 }
 0x7a8   : > { %2055 = shalt.err (!%p2052_p3)
}
 0x7a9   : > { %1851 = dma.vmem_to_hbm [thread:$0]  (%p2480_p0), %s2418_s24, 128, %s2416_s10, %s1623_s22  }
 0x7aa PF: > { %s1648_s29 = sand.u32 1, %s2086_s18   ;;  %p2481_p7 = scmp.ne.s32.totalorder %s2471_s25, 0 }
 0x7ab   : > { %p2482_p9 = scmp.ge.s32.totalorder %s2098_s21, 2  ;;  %s1649_s17 = scalar_lea.sflag [#allocation4], %s1648_s29 }
 0x7ad   : > { %p1865_p12 = pnand %p2482_p9, %p2481_p7 }
 0x7af   : > { %2081 = dma.done.wait (!%p1865_p12), %s1649_s17, 128  }
 0x7b0   : > { %2083 = vsyncadd (!%p1865_p12), %s1649_s17, 4294967168  ;;  %p19_p2 = scmp.ge.s32.totalorder %s2258_s14, 4   ;;  %s2483_s18 = smov %s2090_s19 }
 0x7b1   : > { %s2484_s19 = smov %s2094_s20  ;;  %s2485_s20 = smov %s2274_s27 }
 0x7b2   : > { %s2486_s21 = smov %s2258_s14  ;;  %21 = sbr.rel (!%p19_p2) target bundleno = 6 (0x6), region = 93 }
 0x7b9   :  { %1654 = vsyncpa [#allocation3], 1 }
 0x7ba   :  { %1656 = vsyncpa [#allocation3 + $0x1], 1 }
 0x7bb   :  { %1657 = vsyncpa [#allocation6], 1 }
 0x7bc   :  { %1658 = vsyncpa [#allocation4], 1 }
 0x7bd   :  { %1660 = vsyncpa [#allocation4 + $0x1], 1 }

</bundles_post_ra>
